<compile_context>
chip_gen: v7x
topology: tpu7x:2x2x1
jax: 0.10.0
libtpu: 0.0.40
codegen_flags: <defaults>
</compile_context>

<pallas_src>
import jax
import jax.numpy as jnp
from jax.experimental import pallas as pl
from jax.experimental.pallas import tpu as pltpu


# ----------------------------- kernels --------------------------------------


def _dual_linear_kernel(x1_ref, x2_ref, wt_ref, o1_ref, o2_ref):
    # x1_ref/x2_ref: (TM, E) row tiles; wt_ref: (E, TN) weight tile (resident
    # across the inner M axis); o1_ref/o2_ref: (TM, TN) output tiles.
    w = wt_ref[...]
    o1_ref[...] = jnp.dot(
        x1_ref[...], w, preferred_element_type=jnp.float32
    ).astype(o1_ref.dtype)
    o2_ref[...] = jnp.dot(
        x2_ref[...], w, preferred_element_type=jnp.float32
    ).astype(o2_ref.dtype)


def _single_linear_kernel(x_ref, wt_ref, o_ref):
    o_ref[...] = jnp.dot(
        x_ref[...], wt_ref[...], preferred_element_type=jnp.float32
    ).astype(o_ref.dtype)


# --------------------------- tiling helpers ---------------------------------

_VMEM_TARGET_BYTES = 16 * 1024 * 1024  # fits v5e scoped default, << v7x 64 MiB
_VMEM_LIMIT_BYTES = 32 * 1024 * 1024   # explicit scoped limit, safe on all gens


def _round_up(x, m):
    return ((x + m - 1) // m) * m


def _choose_tiles(m, e, h, itemsize, n_streams):
    """Pick (TM, TN).

    TN: full H if the (double-buffered worst-case) weight tile fits half the
        budget; otherwise the largest multiple of 128 that does (lane-dense).
    TM: largest row tile (multiple of 8, <= 2048) whose pipelined footprint
        (double-buffered inputs + outputs per stream + resident weight) fits.
    """
    # --- choose TN ---
    if 2 * e * h * itemsize <= _VMEM_TARGET_BYTES // 2 or h <= 128:
        tn = h
    else:
        tn = max(128, (h // 128) * 128)
        while tn > 128 and 2 * e * tn * itemsize > _VMEM_TARGET_BYTES // 2:
            tn = max(128, ((tn // 2) // 128) * 128)
    # --- choose TM ---
    tm = 2048
    while tm > 8:
        footprint = (2 * n_streams * tm * (e + tn) + 2 * e * tn) * itemsize
        if footprint <= _VMEM_TARGET_BYTES:
            break
        tm //= 2
    tm = max(8, min(tm, _round_up(m, 8)))
    return tm, tn


# --------------------------- pallas wrappers --------------------------------


def _dual_linear(x1, x2, w_t):
    """x1, x2: (M, E); w_t: (E, H) -> two (M, H) projections, one launch."""
    m, e = x1.shape
    _, h = w_t.shape
    itemsize = x1.dtype.itemsize
    tm, tn = _choose_tiles(m, e, h, itemsize, n_streams=2)
    grid_m = pl.cdiv(m, tm)
    grid_n = pl.cdiv(h, tn)

    cost = pl.CostEstimate(
        flops=2 * 2 * m * e * h,
        transcendentals=0,
        bytes_accessed=itemsize * (2 * m * e + e * h + 2 * m * h),
    )

    # Grid is (N outer, M inner): the weight tile depends only on the outer
    # index, so it is DMA'd once per N tile and stays resident across all row
    # tiles of the inner loop.
    return pl.pallas_call(
        _dual_linear_kernel,
        out_shape=(
            jax.ShapeDtypeStruct((m, h), x1.dtype),
            jax.ShapeDtypeStruct((m, h), x2.dtype),
        ),
        grid=(grid_n, grid_m),
        in_specs=[
            pl.BlockSpec((tm, e), lambda j, i: (i, 0)),
            pl.BlockSpec((tm, e), lambda j, i: (i, 0)),
            pl.BlockSpec((e, tn), lambda j, i: (0, j)),  # resident over M
        ],
        out_specs=(
            pl.BlockSpec((tm, tn), lambda j, i: (i, j)),
            pl.BlockSpec((tm, tn), lambda j, i: (i, j)),
        ),
        compiler_params=pltpu.CompilerParams(
            dimension_semantics=("parallel", "parallel"),
            vmem_limit_bytes=_VMEM_LIMIT_BYTES,
        ),
        cost_estimate=cost,
    )(x1, x2, w_t)


def _single_linear(x, w_t):
    """x: (M, E); w_t: (E, H) -> (M, H). Fallback when sentence shapes differ."""
    m, e = x.shape
    _, h = w_t.shape
    itemsize = x.dtype.itemsize
    tm, tn = _choose_tiles(m, e, h, itemsize, n_streams=1)
    grid_m = pl.cdiv(m, tm)
    grid_n = pl.cdiv(h, tn)

    cost = pl.CostEstimate(
        flops=2 * m * e * h,
        transcendentals=0,
        bytes_accessed=itemsize * (m * e + e * h + m * h),
    )

    return pl.pallas_call(
        _single_linear_kernel,
        out_shape=jax.ShapeDtypeStruct((m, h), x.dtype),
        grid=(grid_n, grid_m),
        in_specs=[
            pl.BlockSpec((tm, e), lambda j, i: (i, 0)),
            pl.BlockSpec((e, tn), lambda j, i: (0, j)),
        ],
        out_specs=pl.BlockSpec((tm, tn), lambda j, i: (i, j)),
        compiler_params=pltpu.CompilerParams(
            dimension_semantics=("parallel", "parallel"),
            vmem_limit_bytes=_VMEM_LIMIT_BYTES,
        ),
        cost_estimate=cost,
    )(x, w_t)


# ------------------------------- module -------------------------------------


class DecomposableEncoderPallas:
    """JAX/Pallas equivalent of the PyTorch DecomposableEncoder forward."""

    def __init__(self, d_embed, hidden_size, para_init, key,
                 compute_dtype=jnp.float32):
        self.embedding_size = d_embed
        self.hidden_size = hidden_size
        self.compute_dtype = compute_dtype
        # nn.Linear weight has shape (hidden_size, d_embed); init ~ N(0, para_init)
        self.weight = para_init * jax.random.normal(
            key, (hidden_size, d_embed), dtype=jnp.float32
        )
        # Pre-transpose once so the hot path is a plain X @ W^T MXU matmul.
        # Set compute_dtype=jnp.bfloat16 for the MXU-native bf16 path
        # (f32 accumulation is kept inside the kernel).
        self.w_t = self.weight.T.astype(compute_dtype)  # (E, H)

    def __call__(self, sent1, sent2):
        b1, b2 = sent1.shape[0], sent2.shape[0]
        out_dtype = sent1.dtype

        s1 = sent1.reshape(-1, self.embedding_size).astype(self.compute_dtype)
        s2 = sent2.reshape(-1, self.embedding_size).astype(self.compute_dtype)

        if s1.shape == s2.shape:
            o1, o2 = _dual_linear(s1, s2, self.w_t)
        else:
            # Different sentence lengths: run the tiled kernel per sentence.
            o1 = _single_linear(s1, self.w_t)
            o2 = _single_linear(s2, self.w_t)

        o1 = o1.astype(out_dtype).reshape(b1, -1, self.hidden_size)
        o2 = o2.astype(out_dtype).reshape(b2, -1, self.hidden_size)
        return [o1, o2]


# -------------------------------- demo --------------------------------------


if __name__ == "__main__":
    batch = 2
    seq = 8
    d_embed = 32
    hidden = 32
    para_init = 0.01

    key = jax.random.PRNGKey(0)
    k_w, k_s1, k_s2 = jax.random.split(key, 3)

    encoder = DecomposableEncoderPallas(d_embed, hidden, para_init, k_w)

    sent1 = jax.random.normal(k_s1, (batch, seq, d_embed), dtype=jnp.float32)
    sent2 = jax.random.normal(k_s2, (batch, seq, d_embed), dtype=jnp.float32)

    out1, out2 = encoder(sent1, sent2)
    out1 = jax.block_until_ready(out1)
    out2 = jax.block_until_ready(out2)

    # Sanity check against plain-JAX reference.
    ref1 = (sent1.reshape(-1, d_embed) @ encoder.weight.T).reshape(batch, -1, hidden)
    ref2 = (sent2.reshape(-1, d_embed) @ encoder.weight.T).reshape(batch, -1, hidden)
    assert out1.shape == (batch, seq, hidden) and out2.shape == (batch, seq, hidden)
    assert jnp.allclose(out1, ref1, atol=1e-5) and jnp.allclose(out2, ref2, atol=1e-5)

    print("KERNEL_OK")
</pallas_src>

<mosaic_0001>
module attributes {stable_mosaic.version = 11 : i64} {
  func.func @_dual_linear_kernel(%arg0: i32, %arg1: i32, %arg2: memref<16x32xf32, #tpu.memory_space<vmem>>, %arg3: memref<16x32xf32, #tpu.memory_space<vmem>>, %arg4: memref<32x32xf32, #tpu.memory_space<vmem>>, %arg5: memref<16x32xf32, #tpu.memory_space<vmem>>, %arg6: memref<16x32xf32, #tpu.memory_space<vmem>>) attributes {dimension_semantics = [#tpu.dimension_semantics<parallel>, #tpu.dimension_semantics<parallel>], iteration_bounds = array<i64: 1, 1>, scalar_prefetch = 0 : i64, scratch_operands = 0 : i64, tpu.core_type = #tpu.core_type<tc>, window_params = [{transform_indices = @transform_0, window_bounds = array<i64: 16, 32>}, {transform_indices = @transform_1, window_bounds = array<i64: 16, 32>}, {transform_indices = @transform_2, window_bounds = array<i64: 32, 32>}, {transform_indices = @transform_3, window_bounds = array<i64: 16, 32>}, {transform_indices = @transform_4, window_bounds = array<i64: 16, 32>}]} {
    %c0 = arith.constant 0 : index
    %c0_0 = arith.constant 0 : index
    %0 = vector.load %arg4[%c0, %c0_0] : memref<32x32xf32, #tpu.memory_space<vmem>>, vector<32x32xf32>
    %c0_1 = arith.constant 0 : index
    %c0_2 = arith.constant 0 : index
    %1 = vector.load %arg2[%c0_1, %c0_2] : memref<16x32xf32, #tpu.memory_space<vmem>>, vector<16x32xf32>
    %cst = arith.constant dense<0.000000e+00> : vector<16x32xf32>
    %2 = tpu.matmul %1, %0, %cst {dimension_numbers = #tpu.dot_dimension_numbers<[1], [0], [0], [1], [0, 0, 1, 1], [], []>} : vector<16x32xf32>, vector<32x32xf32>, vector<16x32xf32> -> vector<16x32xf32>
    %c0_3 = arith.constant 0 : index
    %c0_4 = arith.constant 0 : index
    %3 = vector.load %arg5[%c0_3, %c0_4] : memref<16x32xf32, #tpu.memory_space<vmem>>, vector<16x32xf32>
    tpu.vector_store %arg5[%c0_3, %c0_4], %2 {strides = array<i32>} : memref<16x32xf32, #tpu.memory_space<vmem>>, vector<16x32xf32>,
    %c0_5 = arith.constant 0 : index
    %c0_6 = arith.constant 0 : index
    %4 = vector.load %arg3[%c0_5, %c0_6] : memref<16x32xf32, #tpu.memory_space<vmem>>, vector<16x32xf32>
    %cst_7 = arith.constant dense<0.000000e+00> : vector<16x32xf32>
    %5 = tpu.matmul %4, %0, %cst_7 {dimension_numbers = #tpu.dot_dimension_numbers<[1], [0], [0], [1], [0, 0, 1, 1], [], []>} : vector<16x32xf32>, vector<32x32xf32>, vector<16x32xf32> -> vector<16x32xf32>
    %c0_8 = arith.constant 0 : index
    %c0_9 = arith.constant 0 : index
    %6 = vector.load %arg6[%c0_8, %c0_9] : memref<16x32xf32, #tpu.memory_space<vmem>>, vector<16x32xf32>
    tpu.vector_store %arg6[%c0_8, %c0_9], %5 {strides = array<i32>} : memref<16x32xf32, #tpu.memory_space<vmem>>, vector<16x32xf32>,
    return
  }
  func.func @transform_0(%arg0: i32, %arg1: i32) -> (i32, i32) {
    %c0_i32 = arith.constant 0 : i32
    %c0_i32_0 = arith.constant 0 : i32
    return %arg1, %c0_i32 : i32, i32
  }
  func.func @transform_1(%arg0: i32, %arg1: i32) -> (i32, i32) {
    %c0_i32 = arith.constant 0 : i32
    %c0_i32_0 = arith.constant 0 : i32
    return %arg1, %c0_i32 : i32, i32
  }
  func.func @transform_2(%arg0: i32, %arg1: i32) -> (i32, i32) {
    %c0_i32 = arith.constant 0 : i32
    %c0_i32_0 = arith.constant 0 : i32
    return %c0_i32, %arg0 : i32, i32
  }
  func.func @transform_3(%arg0: i32, %arg1: i32) -> (i32, i32) {
    %c0_i32 = arith.constant 0 : i32
    return %arg1, %arg0 : i32, i32
  }
  func.func @transform_4(%arg0: i32, %arg1: i32) -> (i32, i32) {
    %c0_i32 = arith.constant 0 : i32
    return %arg1, %arg0 : i32, i32
  }
}

</mosaic_0001>

<bundles_post_ra>
// kernel: tpu_custom_call.1
= control target key start
LH: loop header
LB: loop body
LE: loop exit
PB: predicated region body
PF: predicated region fallthrough
CT: control target
= control target key end

     0   :  { %10 = vsyncpa [#allocation3], 0  ;;  %s576_s0 = inlined_call_operand.hbm [shape: f32[16,32], index: 0, kind: input, shape index: {}]   ;;  %s577_s1 = inlined_call_operand.hbm [shape: f32[16,32], index: 1, kind: input, shape index: {}]   ;;  %s578_s2 = inlined_call_operand.hbm [shape: f32[32,32], index: 2, kind: input, shape index: {}]   ;;  %s579_s3 = inlined_call_operand.hbm [shape: f32[16,32], index: 3, kind: output, shape index: {0}]   ;;  %s580_s4 = inlined_call_operand.hbm [shape: f32[16,32], index: 4, kind: output, shape index: {1}]  }
   0x1   :  { %11 = vsyncpa [#allocation6], 0 }
   0x2   :  { %12 = vsyncpa [#allocation4], 0 }
   0x3   :  { %13 = vsyncpa [#allocation10], 0  ;;  %s447_s15 = smov [#allocation5]   ;;  %s448_s17 = smov [#allocation2]  }
   0x4   :  { %s31_s16 = sshll.u32 %s447_s15, 4  ;;  %s19_s18 = sshll.u32 %s448_s17, 4  ;;  %s32_s16 = int_to_ptr.vmem [resolvable:$true] %s31_s16  ;;  %s479_s18 = int_to_ptr.vmem [resolvable:$true] %s19_s18 }
   0x5   :  { %s329_s21 = scalar_lea.hbm %s577_s1, 256 }
   0x6   :  { %p330_p0 = scmp.ne.s32.totalorder %s577_s1, %s329_s21  ;;  %p333_p1 = scmp.lt.u32.totalorder %s329_s21, %s577_s1 }
   0x8   :  { %p335_p2 = pnand %p333_p1, %p330_p0 }
   0xa   :  { %338 = shalt.err (!%p335_p2)
}
   0xb   :  { %s339_s26 = scalar_lea.vmem %s32_s16, 256  ;;  %p344_p4 = scmp.lt.s32.totalorder %s32_s16, %s32_s16 }
   0xc   :  { %p340_p3 = scmp.ne.s32.totalorder %s32_s16, %s339_s26  ;;  %p345_p5 = scmp.lt.s32.totalorder %s339_s26, %s339_s26 }
   0xe   :  { %p346_p6 = por %p345_p5, %p344_p4 }
  0x10   :  { %p347_p7 = pnand %p346_p6, %p340_p3 }
  0x12   :  { %350 = shalt.err (!%p347_p7)
}
  0x13   :  { %s449_s27 = smov 128   ;;  %s450_s28 = smov 8  }
  0x14   :  { %37 = dma.hbm_to_vmem [thread:$0]  %s577_s1, 256, %s32_s16, [#allocation6], %s449_s27, %s449_s27, %s450_s28  }
  0x15   :  { %s351_s7 = scalar_lea.hbm %s576_s0, 256 }
  0x16   :  { %p352_p8 = scmp.ne.s32.totalorder %s576_s0, %s351_s7  ;;  %p355_p9 = scmp.lt.u32.totalorder %s351_s7, %s576_s0 }
  0x18   :  { %p357_p10 = pnand %p355_p9, %p352_p8 }
  0x1a   :  { %360 = shalt.err (!%p357_p10)
}
  0x1b   :  { %s361_s12 = scalar_lea.vmem %s479_s18, 256  ;;  %p366_p12 = scmp.lt.s32.totalorder %s479_s18, %s479_s18 }
  0x1c   :  { %p362_p11 = scmp.ne.s32.totalorder %s479_s18, %s361_s12  ;;  %p367_p13 = scmp.lt.s32.totalorder %s361_s12, %s361_s12 }
  0x1e   :  { %p368_p0 = por %p367_p13, %p366_p12 }
  0x20   :  { %p369_p1 = pnand %p368_p0, %p362_p11 }
  0x22   :  { %372 = shalt.err (!%p369_p1)
}
  0x23   :  { %25 = dma.hbm_to_vmem [thread:$0]  %s576_s0, 256, %s479_s18, [#allocation3], %s449_s27, %s449_s27, %s450_s28  }
  0x24   :  { %s451_s14 = smov [#allocation7]   ;;  %s373_s19 = scalar_lea.hbm %s578_s2, 512 }
  0x25   :  { %s43_s15 = sshll.u32 %s451_s14, 4  ;;  %p374_p2 = scmp.ne.s32.totalorder %s578_s2, %s373_s19  ;;  %s44_s15 = int_to_ptr.vmem [resolvable:$true] %s43_s15 }
  0x26   :  { %p377_p3 = scmp.lt.u32.totalorder %s373_s19, %s578_s2 }
  0x28   :  { %p379_p4 = pnand %p377_p3, %p374_p2 }
  0x2a   :  { %382 = shalt.err (!%p379_p4)
}
  0x2b   :  { %s383_s24 = scalar_lea.vmem %s44_s15, 512  ;;  %p388_p6 = scmp.lt.s32.totalorder %s44_s15, %s44_s15 }
  0x2c   :  { %p384_p5 = scmp.ne.s32.totalorder %s44_s15, %s383_s24  ;;  %p389_p7 = scmp.lt.s32.totalorder %s383_s24, %s383_s24 }
  0x2e   :  { %p390_p8 = por %p389_p7, %p388_p6 }
  0x30   :  { %p391_p9 = pnand %p390_p8, %p384_p5 }
  0x32   :  { %394 = shalt.err (!%p391_p9)
}
  0x33   :  { %49 = dma.hbm_to_vmem [thread:$0]  %s578_s2, 512, %s44_s15, [#allocation6], %s449_s27, %s449_s27, %s450_s28  }
  0x34   :  { %439 = dma.done.wait [#allocation3], 256  }
  0x35   :  { %440 = vsyncadd [#allocation3], 4294967040 }
  0x36   :  { %441 = dma.done.wait [#allocation6], 768  }
  0x37   :  { %442 = vsyncadd [#allocation6], 4294966528  ;;  %vm65_vm0 = vcmask 261120   ;;  %v59_v0 = vld [vmem:[#allocation7] sm:$0xff]  ;;  %v60_v1 = vld [vmem:[#allocation7 + $0x8] sm:$0xff]  ;;  %s452_s2 = smov [#allocation8]  }
  0x38   :  { %v61_v2 = vld [vmem:[#allocation7 + $0x10] sm:$0xff]  ;;  %v306_v3 = vpack.c.bf16 %v60_v1, %v59_v0  ;;  %v62_v4 = vld [vmem:[#allocation7 + $0x18] sm:$0xff]  ;;  %v63_v5 = vld [vmem:[#allocation2] sm:$0xff]  ;;  %s239_s25 = sshll.u32 %s452_s2, 4  ;;  %s453_s26 = smov [#allocation9]   ;;  %s240_s25 = int_to_ptr.vmem [resolvable:$true] %s239_s25 }
  0x39   :  { %v149_v6 = vld [vmem:[#allocation5] sm:$0xff]  ;;  %v310_v7 = vpack.c.bf16 %v62_v4, %v61_v2  ;;  %292 = vmatprep.mubr.msk.f32.mxu0 %vm65_vm0, %v63_v5  ;;  %v64_v8 = vld [vmem:[#allocation2 + $0x8] sm:$0xff]  ;;  %v150_v9 = vld [vmem:[#allocation5 + $0x8] sm:$0xff]  ;;  %s251_s29 = sshll.u32 %s453_s26, 4  ;;  %s395_s30 = scalar_lea.vmem %s240_s25, 256  ;;  %s537_s29 = int_to_ptr.vmem [resolvable:$true] %s251_s29 }
  0x3a   :  { %303 = vmatprep.mubr.msk.f32.mxu1 %vm65_vm0, %v149_v6  ;;  %307 = vmatprep.subr.bf16.mxu0 %v306_v3  ;;  %p396_p10 = scmp.ne.s32.totalorder %s240_s25, %s395_s30  ;;  %p400_p11 = scmp.lt.s32.totalorder %s240_s25, %s240_s25 }
  0x3b   :  { %315 = vmatprep.subr.bf16.mxu1 %v306_v3  ;;  %309 = vmatpush3.bf16.msra.mxu0 %v306_v3  ;;  %p401_p12 = scmp.lt.s32.totalorder %s395_s30, %s395_s30 }
  0x3c   :  { %317 = vmatpush3.bf16.msra.mxu1 %v306_v3  ;;  %311 = vmatprep.subr.bf16.mxu0 %v310_v7 }
  0x3d   :  { %319 = vmatprep.subr.bf16.mxu1 %v310_v7  ;;  %p402_p13 = por %p401_p12, %p400_p11 }
  0x3f   :  { %313 = vmatpush3.bf16.msra.mxu0 %v310_v7  ;;  %p403_p0 = pnand %p402_p13, %p396_p10 }
  0x40   :  { %321 = vmatpush3.bf16.msra.mxu1 %v310_v7 }
  0x42   :  { %293 = vmatmul.mubr.msk.f32.vlgmr.msra.gmra.mrb[0].mxu0 %vm65_vm0, %v64_v8 }
  0x43   :  { %304 = vmatmul.mubr.msk.f32.vlgmr.msra.gmra.mrb[0].mxu1 %vm65_vm0, %v150_v9 }
 0x115   :  { %v294_v10 = vpop.f32.mrb[0].mxu0 }
 0x116   :  { %v305_v11 = vpop.f32.mrb[0].mxu1  ;;  %148 = vst.msk [vmem:[#allocation8 + $0x8] sm:$0xff] %vm65_vm0, %v294_v10  ;;  %v138_v12 = vpop.f32.mrb[1].mxu0 }
 0x117   :  { %233 = vst.msk [vmem:[#allocation9 + $0x8] sm:$0xff] %vm65_vm0, %v305_v11  ;;  %v223_v13 = vpop.f32.mrb[1].mxu1  ;;  %147 = vst.msk [vmem:[#allocation8] sm:$0xff] %vm65_vm0, %v138_v12 }
 0x118   :  { %232 = vst.msk [vmem:[#allocation9] sm:$0xff] %vm65_vm0, %v223_v13 }
 0x119   :  { %406 = shalt.err (!%p403_p0)
}
 0x11a   :  { %s407_s7 = scalar_lea.hbm %s579_s3, 256 }
 0x11b   :  { %p408_p1 = scmp.ne.s32.totalorder %s579_s3, %s407_s7  ;;  %p411_p2 = scmp.lt.u32.totalorder %s407_s7, %s579_s3 }
 0x11d   :  { %p413_p3 = pnand %p411_p2, %p408_p1 }
 0x11f   :  { %416 = shalt.err (!%p413_p3)
}
 0x120   :  { %245 = dma.vmem_to_hbm [thread:$0]  %s240_s25, 256, %s579_s3, [#allocation4], %s449_s27, %s449_s27, %s450_s28  }
 0x121   :  { %s417_s13 = scalar_lea.vmem %s537_s29, 256  ;;  %p422_p5 = scmp.lt.s32.totalorder %s537_s29, %s537_s29 }
 0x122   :  { %p418_p4 = scmp.ne.s32.totalorder %s537_s29, %s417_s13  ;;  %p423_p6 = scmp.lt.s32.totalorder %s417_s13, %s417_s13 }
 0x124   :  { %p424_p7 = por %p423_p6, %p422_p5 }
 0x126   :  { %p425_p8 = pnand %p424_p7, %p418_p4 }
 0x128   :  { %428 = shalt.err (!%p425_p8)
}
 0x129   :  { %s429_s16 = scalar_lea.hbm %s580_s4, 256 }
 0x12a   :  { %p430_p9 = scmp.ne.s32.totalorder %s580_s4, %s429_s16  ;;  %p433_p10 = scmp.lt.u32.totalorder %s429_s16, %s580_s4 }
 0x12c   :  { %p435_p11 = pnand %p433_p10, %p430_p9 }
 0x12e   :  { %438 = shalt.err (!%p435_p11)
}
 0x12f   :  { %257 = dma.vmem_to_hbm [thread:$0]  %s537_s29, 256, %s580_s4, [#allocation10], %s449_s27, %s449_s27, %s450_s28  }
 0x130   :  { %443 = dma.done.wait [#allocation4], 256  }
 0x131   :  { %444 = vsyncadd [#allocation4], 4294967040 }
 0x132   :  { %445 = dma.done.wait [#allocation10], 256  }
 0x133   :  { %446 = vsyncadd [#allocation10], 4294967040 }
 0x134   :  { %264 = vsyncpa [#allocation3], 1 }
 0x135   :  { %265 = vsyncpa [#allocation6], 1 }
 0x136   :  { %266 = vsyncpa [#allocation4], 1 }
 0x137   :  { %267 = vsyncpa [#allocation10], 1 }

</bundles_post_ra>
